<compile_context>
chip_gen: v7x
topology: tpu7x:2x2x1
jax: 0.10.0
libtpu: 0.0.40
codegen_flags: <defaults>
</compile_context>

<pallas_src>
import functools

import jax
import jax.numpy as jnp
from jax.experimental import pallas as pl
from jax.experimental.pallas import tpu as pltpu

HIDDEN = 64      # logical hidden width of the module
HID_PAD = 128    # padded hidden width used inside the kernel (bit-identical, see above)


def _round_up(x: int, m: int) -> int:
    return ((x + m - 1) // m) * m


def _cdiv(a: int, b: int) -> int:
    return -(-a // b)


def _mlp_kernel(x_ref, w1_ref, b1_ref, w2_ref, b2_ref, w3_ref, b3_ref, o_ref,
                *, tanh_bf16=False):
    """Fused 3-layer MLP with tanh activations, one batch tile per grid step.

    Matmuls run in the weight dtype (f32 or bf16) with f32 accumulation; the
    activation cast happens in-kernel so obs is streamed from HBM as f32 once.
    Bias-add stays f32; tanh is f32 unless tanh_bf16 (v6e/v7x only).
    """
    x = x_ref[...].astype(w1_ref.dtype)

    h1 = jnp.dot(x, w1_ref[...], preferred_element_type=jnp.float32) + b1_ref[...]
    h1 = jnp.tanh(h1.astype(jnp.bfloat16)) if tanh_bf16 else jnp.tanh(h1)

    h2 = jnp.dot(h1.astype(w2_ref.dtype), w2_ref[...],
                 preferred_element_type=jnp.float32) + b2_ref[...]
    h2 = jnp.tanh(h2.astype(jnp.bfloat16)) if tanh_bf16 else jnp.tanh(h2)

    out = jnp.dot(h2.astype(w3_ref.dtype), w3_ref[...],
                  preferred_element_type=jnp.float32) + b3_ref[...]
    o_ref[...] = out.astype(o_ref.dtype)


@functools.partial(jax.jit,
                   static_argnames=("batch_tile", "use_bf16", "tanh_bf16", "min_steps"))
def actor_critic_forward(obs, params, *, batch_tile=2048, use_bf16=False,
                         tanh_bf16=False, min_steps=1):
    """obs: (B, in_features) float32. params: dict of w1,b1,w2,b2,w3,b3 (w's are (in,out)).

    batch_tile : max rows per grid step (sweep 1024-4096 f32 / 2048-8192 bf16).
    use_bf16   : bf16 MXU operands (recommended on v5e/v6e/v7x); f32 accumulation kept.
    tanh_bf16  : do tanh in bf16 (v6e/v7x only — keep False on v5e).
    min_steps  : set 2 on v7x so both TensorCores get work even for moderate B.
    """
    w1, b1 = params["w1"], params["b1"]
    w2, b2 = params["w2"], params["b2"]
    w3, b3 = params["w3"], params["b3"]

    B, in_features = obs.shape
    out_features = w3.shape[1]
    out_dtype = obs.dtype  # output stays f32 (matches the PyTorch module); the output
    #                        stream is narrow now, so f32 writeback is no longer dominant.

    # --- Hidden-dim padding 64 -> 128 (bit-identical, makes MXU passes full-lane) ----
    hpad = HID_PAD - HIDDEN
    w1p = jnp.pad(w1, ((0, 0), (0, hpad)))
    b1p = jnp.pad(b1, ((0, hpad),)).reshape(1, HID_PAD).astype(jnp.float32)
    w2p = jnp.pad(w2, ((0, hpad), (0, hpad)))
    b2p = jnp.pad(b2, ((0, hpad),)).reshape(1, HID_PAD).astype(jnp.float32)
    w3p = jnp.pad(w3, ((0, hpad), (0, 0)))
    b3r = b3.reshape(1, out_features).astype(jnp.float32)

    # --- Optional bf16 matmul operands: cast only the (tiny) weights in the wrapper;
    #     obs stays f32 in HBM and is cast inside the kernel. -------------------------
    if use_bf16:
        w1p = w1p.astype(jnp.bfloat16)
        w2p = w2p.astype(jnp.bfloat16)
        w3p = w3p.astype(jnp.bfloat16)

    # --- Balanced batch tiling: <8 rows of padding per step --------------------------
    sublane_align = 8  # obs is f32 in HBM
    n_steps = max(_cdiv(B, batch_tile), min_steps)
    tile = _round_up(max(_cdiv(B, n_steps), 1), sublane_align)
    B_pad = n_steps * tile
    if B_pad != B:
        obs = jnp.pad(obs, ((0, B_pad - B), (0, 0)))
    grid = (n_steps,)

    kernel = functools.partial(_mlp_kernel, tanh_bf16=bool(tanh_bf16 and use_bf16))

    # VMEM: at tile=2048 the obs block is 64 KiB, output block 32 KiB, weights ~70 KiB
    # and h1/h2 temporaries ~1 MiB each — far inside every generation's scoped limit.
    out = pl.pallas_call(
        kernel,
        out_shape=jax.ShapeDtypeStruct((B_pad, out_features), out_dtype),
        grid_spec=pltpu.PrefetchScalarGridSpec(
            num_scalar_prefetch=0,
            grid=grid,
            in_specs=[
                # activations: tiled over batch
                pl.BlockSpec((tile, in_features), lambda i: (i, 0)),
                # weights / biases: resident, same block every step
                pl.BlockSpec((in_features, HID_PAD), lambda i: (0, 0)),
                pl.BlockSpec((1, HID_PAD), lambda i: (0, 0)),
                pl.BlockSpec((HID_PAD, HID_PAD), lambda i: (0, 0)),
                pl.BlockSpec((1, HID_PAD), lambda i: (0, 0)),
                pl.BlockSpec((HID_PAD, out_features), lambda i: (0, 0)),
                pl.BlockSpec((1, out_features), lambda i: (0, 0)),
            ],
            # Output at natural width: last block dim == full array dim (legal), so no
            # padded writeback and no post-kernel column-slice copy.
            out_specs=pl.BlockSpec((tile, out_features), lambda i: (i, 0)),
        ),
        compiler_params=pltpu.CompilerParams(
            dimension_semantics=("parallel",)),
    )(obs, w1p, b1p, w2p, b2p, w3p, b3r)

    # Strip batch padding only (no column slice needed anymore).
    return out if B_pad == B else out[:B]


def init_params(key, in_features, out_features):
    """Deterministic PyTorch-style (Kaiming-uniform-ish) init, weights pre-transposed to (in, out)."""
    ks = jax.random.split(key, 6)

    def linear(kw, kb, fan_in, fan_out):
        bound = 1.0 / jnp.sqrt(jnp.float32(fan_in))
        w = jax.random.uniform(kw, (fan_in, fan_out), jnp.float32, -bound, bound)
        b = jax.random.uniform(kb, (fan_out,), jnp.float32, -bound, bound)
        return w, b

    w1, b1 = linear(ks[0], ks[1], in_features, HIDDEN)
    w2, b2 = linear(ks[2], ks[3], HIDDEN, HIDDEN)
    w3, b3 = linear(ks[4], ks[5], HIDDEN, out_features)
    return {"w1": w1, "b1": b1, "w2": w2, "b2": b2, "w3": w3, "b3": b3}


def reference_forward(obs, params):
    h = jnp.tanh(obs @ params["w1"] + params["b1"])
    h = jnp.tanh(h @ params["w2"] + params["b2"])
    return h @ params["w3"] + params["b3"]


def _min_steps_for_device():
    """Use 2 grid steps per chip on v7x (2 TensorCores); 1 elsewhere."""
    try:
        return 2 if "v7" in jax.devices()[0].device_kind.lower() else 1
    except Exception:  # pragma: no cover
        return 1


if __name__ == "__main__":
    key = jax.random.PRNGKey(0)
    k_obs, k_params, k_big = jax.random.split(key, 3)

    batch, in_features, out_features = 16, 8, 4
    obs = jax.random.normal(k_obs, (batch, in_features), jnp.float32)
    params = init_params(k_params, in_features, out_features)
    ref = reference_forward(obs, params)

    # 1) Tiny batch, f32 path: collapses to a single grid step, natural-width output.
    out = jax.block_until_ready(actor_critic_forward(obs, params))
    assert out.shape == (batch, out_features)
    assert jnp.allclose(out, ref, atol=1e-5, rtol=1e-5), "f32 mismatch vs. JAX reference"

    # 2) Non-divisible larger batch: exercises balanced tiling + multi-step grid.
    big_b = 300
    obs_big = jax.random.normal(k_big, (big_b, in_features), jnp.float32)
    out_big = jax.block_until_ready(
        actor_critic_forward(obs_big, params, batch_tile=128))
    ref_big = reference_forward(obs_big, params)
    assert out_big.shape == (big_b, out_features)
    assert jnp.allclose(out_big, ref_big, atol=1e-5, rtol=1e-5), "balanced-tile mismatch"

    # 3) bf16 matmul-operand path (obs cast in-kernel, f32 accumulation/tanh/output).
    out_bf16 = jax.block_until_ready(
        actor_critic_forward(obs, params, use_bf16=True))
    assert out_bf16.shape == (batch, out_features)
    assert jnp.allclose(out_bf16, ref, atol=2e-2, rtol=2e-2), "bf16 mismatch vs. JAX reference"

    # 4) Forced >=2 grid steps (v7x dual-TensorCore path); safe on all generations.
    out_ms = jax.block_until_ready(
        actor_critic_forward(obs, params, min_steps=max(2, _min_steps_for_device())))
    assert jnp.allclose(out_ms, ref, atol=1e-5, rtol=1e-5), "min_steps mismatch"

    # TODO(synk): `.to('cpu')` in the PyTorch forward is a host transfer, not kernel compute.
    print("KERNEL_OK")
</pallas_src>

<mosaic_0001>
module attributes {stable_mosaic.version = 11 : i64} {
  func.func @_mlp_kernel(%arg0: i32, %arg1: memref<16x8xf32, #tpu.memory_space<vmem>>, %arg2: memref<8x128xf32, #tpu.memory_space<vmem>>, %arg3: memref<1x128xf32, #tpu.memory_space<vmem>>, %arg4: memref<128x128xf32, #tpu.memory_space<vmem>>, %arg5: memref<1x128xf32, #tpu.memory_space<vmem>>, %arg6: memref<128x4xf32, #tpu.memory_space<vmem>>, %arg7: memref<1x4xf32, #tpu.memory_space<vmem>>, %arg8: memref<16x4xf32, #tpu.memory_space<vmem>>) attributes {dimension_semantics = [#tpu.dimension_semantics<parallel>], iteration_bounds = array<i64: 1>, scalar_prefetch = 0 : i64, scratch_operands = 0 : i64, tpu.core_type = #tpu.core_type<tc>, window_params = [{transform_indices = @transform_0, window_bounds = array<i64: 16, 8>}, {pipeline_mode = #tpu.pipeline_mode<synchronous>, transform_indices = @transform_1, window_bounds = array<i64: 8, 128>}, {pipeline_mode = #tpu.pipeline_mode<synchronous>, transform_indices = @transform_2, window_bounds = array<i64: 1, 128>}, {pipeline_mode = #tpu.pipeline_mode<synchronous>, transform_indices = @transform_3, window_bounds = array<i64: 128, 128>}, {pipeline_mode = #tpu.pipeline_mode<synchronous>, transform_indices = @transform_4, window_bounds = array<i64: 1, 128>}, {pipeline_mode = #tpu.pipeline_mode<synchronous>, transform_indices = @transform_5, window_bounds = array<i64: 128, 4>}, {pipeline_mode = #tpu.pipeline_mode<synchronous>, transform_indices = @transform_6, window_bounds = array<i64: 1, 4>}, {transform_indices = @transform_7, window_bounds = array<i64: 16, 4>}]} {
    %c0 = arith.constant 0 : index
    %c0_0 = arith.constant 0 : index
    %0 = vector.load %arg1[%c0, %c0_0] : memref<16x8xf32, #tpu.memory_space<vmem>>, vector<16x8xf32>
    %c0_1 = arith.constant 0 : index
    %c0_2 = arith.constant 0 : index
    %1 = vector.load %arg2[%c0_1, %c0_2] : memref<8x128xf32, #tpu.memory_space<vmem>>, vector<8x128xf32>
    %cst = arith.constant dense<0.000000e+00> : vector<16x128xf32>
    %2 = tpu.matmul %0, %1, %cst {dimension_numbers = #tpu.dot_dimension_numbers<[1], [0], [0], [1], [0, 0, 1, 1], [], []>} : vector<16x8xf32>, vector<8x128xf32>, vector<16x128xf32> -> vector<16x128xf32>
    %c0_3 = arith.constant 0 : index
    %c0_4 = arith.constant 0 : index
    %3 = vector.load %arg3[%c0_3, %c0_4] : memref<1x128xf32, #tpu.memory_space<vmem>>, vector<1x128xf32>
    %4 = vector.broadcast %3 : vector<1x128xf32> to vector<16x128xf32>
    %5 = arith.addf %2, %4 : vector<16x128xf32>
    %6 = math.tanh %5 : vector<16x128xf32>
    %c0_5 = arith.constant 0 : index
    %c0_6 = arith.constant 0 : index
    %7 = vector.load %arg4[%c0_5, %c0_6] : memref<128x128xf32, #tpu.memory_space<vmem>>, vector<128x128xf32>
    %cst_7 = arith.constant dense<0.000000e+00> : vector<16x128xf32>
    %8 = tpu.matmul %6, %7, %cst_7 {dimension_numbers = #tpu.dot_dimension_numbers<[1], [0], [0], [1], [0, 0, 1, 1], [], []>} : vector<16x128xf32>, vector<128x128xf32>, vector<16x128xf32> -> vector<16x128xf32>
    %c0_8 = arith.constant 0 : index
    %c0_9 = arith.constant 0 : index
    %9 = vector.load %arg5[%c0_8, %c0_9] : memref<1x128xf32, #tpu.memory_space<vmem>>, vector<1x128xf32>
    %10 = vector.broadcast %9 : vector<1x128xf32> to vector<16x128xf32>
    %11 = arith.addf %8, %10 : vector<16x128xf32>
    %12 = math.tanh %11 : vector<16x128xf32>
    %c0_10 = arith.constant 0 : index
    %c0_11 = arith.constant 0 : index
    %13 = vector.load %arg6[%c0_10, %c0_11] : memref<128x4xf32, #tpu.memory_space<vmem>>, vector<128x4xf32>
    %cst_12 = arith.constant dense<0.000000e+00> : vector<16x4xf32>
    %14 = tpu.matmul %12, %13, %cst_12 {dimension_numbers = #tpu.dot_dimension_numbers<[1], [0], [0], [1], [0, 0, 1, 1], [], []>} : vector<16x128xf32>, vector<128x4xf32>, vector<16x4xf32> -> vector<16x4xf32>
    %c0_13 = arith.constant 0 : index
    %c0_14 = arith.constant 0 : index
    %15 = vector.load %arg7[%c0_13, %c0_14] : memref<1x4xf32, #tpu.memory_space<vmem>>, vector<1x4xf32>
    %16 = vector.broadcast %15 : vector<1x4xf32> to vector<16x4xf32>
    %17 = arith.addf %14, %16 : vector<16x4xf32>
    %c0_15 = arith.constant 0 : index
    %c0_16 = arith.constant 0 : index
    %18 = vector.load %arg8[%c0_15, %c0_16] : memref<16x4xf32, #tpu.memory_space<vmem>>, vector<16x4xf32>
    tpu.vector_store %arg8[%c0_15, %c0_16], %17 {strides = array<i32>} : memref<16x4xf32, #tpu.memory_space<vmem>>, vector<16x4xf32>,
    return
  }
  func.func @transform_0(%arg0: i32) -> (i32, i32) {
    %c0_i32 = arith.constant 0 : i32
    %c0_i32_0 = arith.constant 0 : i32
    return %arg0, %c0_i32 : i32, i32
  }
  func.func @transform_1(%arg0: i32) -> (i32, i32) {
    %c0_i32 = arith.constant 0 : i32
    %c0_i32_0 = arith.constant 0 : i32
    %c0_i32_1 = arith.constant 0 : i32
    return %c0_i32, %c0_i32_0 : i32, i32
  }
  func.func @transform_2(%arg0: i32) -> (i32, i32) {
    %c0_i32 = arith.constant 0 : i32
    %c0_i32_0 = arith.constant 0 : i32
    %c0_i32_1 = arith.constant 0 : i32
    return %c0_i32, %c0_i32_0 : i32, i32
  }
  func.func @transform_3(%arg0: i32) -> (i32, i32) {
    %c0_i32 = arith.constant 0 : i32
    %c0_i32_0 = arith.constant 0 : i32
    %c0_i32_1 = arith.constant 0 : i32
    return %c0_i32, %c0_i32_0 : i32, i32
  }
  func.func @transform_4(%arg0: i32) -> (i32, i32) {
    %c0_i32 = arith.constant 0 : i32
    %c0_i32_0 = arith.constant 0 : i32
    %c0_i32_1 = arith.constant 0 : i32
    return %c0_i32, %c0_i32_0 : i32, i32
  }
  func.func @transform_5(%arg0: i32) -> (i32, i32) {
    %c0_i32 = arith.constant 0 : i32
    %c0_i32_0 = arith.constant 0 : i32
    %c0_i32_1 = arith.constant 0 : i32
    return %c0_i32, %c0_i32_0 : i32, i32
  }
  func.func @transform_6(%arg0: i32) -> (i32, i32) {
    %c0_i32 = arith.constant 0 : i32
    %c0_i32_0 = arith.constant 0 : i32
    %c0_i32_1 = arith.constant 0 : i32
    return %c0_i32, %c0_i32_0 : i32, i32
  }
  func.func @transform_7(%arg0: i32) -> (i32, i32) {
    %c0_i32 = arith.constant 0 : i32
    %c0_i32_0 = arith.constant 0 : i32
    return %arg0, %c0_i32 : i32, i32
  }
}

</mosaic_0001>

<bundles_post_ra>
// kernel: actor_critic_forward.1
= control target key start
LH: loop header
LB: loop body
LE: loop exit
PB: predicated region body
PF: predicated region fallthrough
CT: control target
= control target key end

     0   :  { %vm36_vm0 = vcmask 64512   ;;  %vm318_vm1 = vcmask 31744   ;;  %s676_s1 = inlined_call_operand.vmem [shape: f32[8,128], index: 1, kind: input, shape index: {}]   ;;  %s677_s0 = inlined_call_operand.vmem [shape: f32[16,8], index: 0, kind: input, shape index: {}]   ;;  %s678_s3 = inlined_call_operand.vmem [shape: f32[128,128], index: 3, kind: input, shape index: {}]   ;;  %s679_s5 = inlined_call_operand.vmem [shape: f32[128,4], index: 5, kind: input, shape index: {}]   ;;  %s680_s2 = inlined_call_operand.vmem [shape: f32[1,128], index: 2, kind: input, shape index: {}]   ;;  %s681_s4 = inlined_call_operand.vmem [shape: f32[1,128], index: 4, kind: input, shape index: {}]   ;;  %s682_s6 = inlined_call_operand.vmem [shape: f32[1,4], index: 6, kind: input, shape index: {}]   ;;  %s683_s7 = inlined_call_operand.vmem [shape: f32[16,4], index: 7, kind: output, shape index: {}]  }
   0x1   :  { %v28_v0 = vld [vmem:[%s676_s1] sm:$0xff]  ;;  %v27_v2 = vld [vmem:[%s677_s0 + $0x8] sm:$0xff]  ;;  %v122_v5 = vld [vmem:[%s678_s3 + $0x10] sm:$0xff] }
   0x2   :  { %v26_v1 = vld [vmem:[%s677_s0] sm:$0xff]  ;;  %369 = vmatprep.subr.mxu0 %v28_v0  ;;  %v121_v4 = vld [vmem:[%s678_s3 + $0x8] sm:$0xff]  ;;  %v123_v7 = vld [vmem:[%s678_s3 + $0x18] sm:$0xff] }
   0x3   :  { %371 = vmatprep.mubr.msk.f32.mxu0 %vm36_vm0, %v26_v1  ;;  %v120_v3 = vld [vmem:[%s678_s3] sm:$0xff]  ;;  %370 = vmatpush3.msra.mxu0 %v28_v0  ;;  %v448_v8 = vpack.c.bf16 %v123_v7, %v122_v5  ;;  %v125_v10 = vld [vmem:[%s678_s3 + $0x28] sm:$0xff]  ;;  %v126_v12 = vld [vmem:[%s678_s3 + $0x30] sm:$0xff] }
   0x4   :  { %v444_v6 = vpack.c.bf16 %v121_v4, %v120_v3  ;;  %372 = vmatmul.mubr.msk.f32.vlgmr.msra.gmra.mrb[0].mxu0 %vm36_vm0, %v27_v2  ;;  %v124_v9 = vld [vmem:[%s678_s3 + $0x20] sm:$0xff]  ;;  %v127_v13 = vld [vmem:[%s678_s3 + $0x38] sm:$0xff]  ;;  %v129_v16 = vld [vmem:[%s678_s3 + $0x48] sm:$0xff] }
   0x5   :  { %v452_v11 = vpack.c.bf16 %v125_v10, %v124_v9  ;;  %v456_v14 = vpack.c.bf16 %v127_v13, %v126_v12  ;;  %v128_v15 = vld [vmem:[%s678_s3 + $0x40] sm:$0xff]  ;;  %v130_v18 = vld [vmem:[%s678_s3 + $0x50] sm:$0xff]  ;;  %v131_v19 = vld [vmem:[%s678_s3 + $0x58] sm:$0xff] }
   0x6   :  { %445 = vmatprep.subr.bf16.mxu1 %v444_v6  ;;  %v460_v17 = vpack.c.bf16 %v129_v16, %v128_v15  ;;  %v464_v20 = vpack.c.bf16 %v131_v19, %v130_v18  ;;  %v132_v21 = vld [vmem:[%s678_s3 + $0x60] sm:$0xff]  ;;  %v133_v22 = vld [vmem:[%s678_s3 + $0x68] sm:$0xff]  ;;  %v134_v23 = vld [vmem:[%s678_s3 + $0x70] sm:$0xff] }
   0x7   :  { %447 = vmatpush3.bf16.msra.mxu1 %v444_v6  ;;  %v468_v24 = vpack.c.bf16 %v133_v22, %v132_v21  ;;  %v135_v25 = vld [vmem:[%s678_s3 + $0x78] sm:$0xff]  ;;  %v220_v27 = vld [vmem:[%s679_s5] sm:$0xff]  ;;  %v221_v28 = vld [vmem:[%s679_s5 + $0x8] sm:$0xff] }
   0x8   :  { %449 = vmatprep.subr.bf16.mxu1 %v448_v8  ;;  %v472_v26 = vpack.c.bf16 %v135_v25, %v134_v23  ;;  %v222_v29 = vld [vmem:[%s679_s5 + $0x10] sm:$0xff]  ;;  %v476_v30 = vpack.c.bf16 %v221_v28, %v220_v27  ;;  %v223_v31 = vld [vmem:[%s679_s5 + $0x18] sm:$0xff]  ;;  %v224_v33 = vld [vmem:[%s679_s5 + $0x20] sm:$0xff] }
   0x9   :  { %v480_v32 = vpack.c.bf16 %v223_v31, %v222_v29  ;;  %v225_v34 = vld [vmem:[%s679_s5 + $0x28] sm:$0xff]  ;;  %v226_v36 = vld [vmem:[%s679_s5 + $0x30] sm:$0xff]  ;;  %v227_v37 = vld [vmem:[%s679_s5 + $0x38] sm:$0xff] }
   0xa   :  { %477 = vmatprep.subr.bf16.mxu0 %v476_v30  ;;  %v484_v35 = vpack.c.bf16 %v225_v34, %v224_v33  ;;  %v488_v38 = vpack.c.bf16 %v227_v37, %v226_v36  ;;  %v325_v39 = vld [vmem:[%s680_s2] ss:$0 sm:$0xff]  ;;  %v229_v47 = vld [vmem:[%s679_s5 + $0x48] sm:$0xff]  ;;  %v230_v49 = vld [vmem:[%s679_s5 + $0x50] sm:$0xff] }
   0xb   :  { %451 = vmatpush3.bf16.msra.mxu1 %v448_v8  ;;  %479 = vmatpush3.bf16.msra.mxu0 %v476_v30  ;;  %v228_v46 = vld [vmem:[%s679_s5 + $0x40] sm:$0xff]  ;;  %v231_v50 = vld [vmem:[%s679_s5 + $0x58] sm:$0xff]  ;;  %v233_v53 = vld [vmem:[%s679_s5 + $0x68] sm:$0xff] }
   0xc   :  { %453 = vmatprep.subr.bf16.mxu1 %v452_v11  ;;  %481 = vmatprep.subr.bf16.mxu0 %v480_v32  ;;  %v492_v48 = vpack.c.bf16 %v229_v47, %v228_v46  ;;  %v496_v51 = vpack.c.bf16 %v231_v50, %v230_v49  ;;  %v232_v52 = vld [vmem:[%s679_s5 + $0x60] sm:$0xff]  ;;  %v234_v54 = vld [vmem:[%s679_s5 + $0x70] sm:$0xff]  ;;  %v235_v56 = vld [vmem:[%s679_s5 + $0x78] sm:$0xff] }
   0xd   :  { %v500_v55 = vpack.c.bf16 %v233_v53, %v232_v52  ;;  %v504_v57 = vpack.c.bf16 %v235_v56, %v234_v54  ;;  %v328_v58 = vld [vmem:[%s681_s4] ss:$0 sm:$0xff] }
   0xe   :  { %v329_v1 = vld [vmem:[%s682_s6] ss:$0 sm:$0xff] }
   0xf   :  { %455 = vmatpush3.bf16.msra.mxu1 %v452_v11  ;;  %483 = vmatpush3.bf16.msra.mxu0 %v480_v32 }
  0x10   :  { %457 = vmatprep.subr.bf16.mxu1 %v456_v14  ;;  %485 = vmatprep.subr.bf16.mxu0 %v484_v35 }
  0x13   :  { %459 = vmatpush3.bf16.msra.mxu1 %v456_v14  ;;  %487 = vmatpush3.bf16.msra.mxu0 %v484_v35 }
  0x14   :  { %461 = vmatprep.subr.bf16.mxu1 %v460_v17  ;;  %489 = vmatprep.subr.bf16.mxu0 %v488_v38 }
  0x17   :  { %463 = vmatpush3.bf16.msra.mxu1 %v460_v17  ;;  %491 = vmatpush3.bf16.msra.mxu0 %v488_v38 }
  0x18   :  { %465 = vmatprep.subr.bf16.mxu1 %v464_v20  ;;  %493 = vmatprep.subr.bf16.mxu0 %v492_v48 }
  0x1b   :  { %467 = vmatpush3.bf16.msra.mxu1 %v464_v20  ;;  %495 = vmatpush3.bf16.msra.mxu0 %v492_v48 }
  0x1c   :  { %469 = vmatprep.subr.bf16.mxu1 %v468_v24  ;;  %497 = vmatprep.subr.bf16.mxu0 %v496_v51 }
  0x1f   :  { %471 = vmatpush3.bf16.msra.mxu1 %v468_v24  ;;  %499 = vmatpush3.bf16.msra.mxu0 %v496_v51 }
  0x20   :  { %473 = vmatprep.subr.bf16.mxu1 %v472_v26  ;;  %501 = vmatprep.subr.bf16.mxu0 %v500_v55 }
  0x23   :  { %475 = vmatpush3.bf16.msra.mxu1 %v472_v26  ;;  %503 = vmatpush3.bf16.msra.mxu0 %v500_v55 }
  0x24   :  { %505 = vmatprep.subr.bf16.mxu0 %v504_v57 }
  0x27   :  { %507 = vmatpush3.bf16.msra.mxu0 %v504_v57 }
  0xd7   :  { %v373_v40 = vpop.f32.mrb[0].mxu0 }
  0xd8   :  { %v115_v41 = vadd.f32 %v373_v40, %v325_v39  ;;  %v109_v42 = vpop.f32.mrb[1].mxu0 }
  0xd9   :  { %v110_v43 = vadd.f32 %v325_v39, %v109_v42 }
  0xdb   :  { %508 = vtanh.f32 %v110_v43 }
  0xdc   :  { %510 = vtanh.f32 %v115_v41 }
  0xe5   :  { %v509_v44 = vpop.eup %508 }
  0xe6   :  { %v511_v45 = vpop.eup %510  ;;  %406 = vmatprep.mubr.f32.mxu1 %v509_v44 }
  0xe7   :  { %407 = vmatmul.mubr.f32.vlgmr.msra.gmra.mrb[0].mxu1 %v511_v45 }
 0x1ba   :  { %v408_v59 = vpop.f32.mrb[0].mxu1 }
 0x1bb   :  { %v215_v60 = vadd.f32 %v408_v59, %v328_v58  ;;  %v209_v61 = vpop.f32.mrb[1].mxu1 }
 0x1bc   :  { %v210_v62 = vadd.f32 %v328_v58, %v209_v61 }
 0x1be   :  { %512 = vtanh.f32 %v210_v62 }
 0x1bf   :  { %514 = vtanh.f32 %v215_v60 }
 0x1c8   :  { %v513_v63 = vpop.eup %512 }
 0x1c9   :  { %v515_v0 = vpop.eup %514  ;;  %441 = vmatprep.mubr.f32.mxu0 %v513_v63 }
 0x1ca   :  { %442 = vmatmul.mubr.f32.vlgmr.msra.gmra.mrb[2].mxu0 %v515_v0 }
 0x29d   :  { %v443_v2 = vpop.f32.mrb[2].mxu0 }
 0x29e   :  { %v315_v3 = vadd.f32 %v443_v2, %v329_v1  ;;  %v309_v4 = vpop.f32.mrb[3].mxu0 }
 0x29f   :  { %v310_v5 = vadd.f32 %v329_v1, %v309_v4 }
 0x2a0   :  { %320 = vst.msk [vmem:[%s683_s7 + $0x8] sm:$0xff] %vm318_vm1, %v315_v3 }
 0x2a1   :  { %319 = vst.msk [vmem:[%s683_s7] sm:$0xff] %vm318_vm1, %v310_v5 }

</bundles_post_ra>
